<compile_context>
chip_gen: v7x
topology: tpu7x:2x2x1
jax: 0.10.0
libtpu: 0.0.40
codegen_flags: <defaults>
</compile_context>

<pallas_src>
import jax
import jax.numpy as jnp
from jax.experimental import pallas as pl
from jax.experimental.pallas import tpu as pltpu


def _round_up(x, m):
    return -(-x // m) * m


# --------------------------------------------------------------------------
# Fused kernel: upconv(+bias+pad) -> concat -> (conv3x3+BN+ReLU) x 2
# One grid step processes one batch element; everything is channel-major
# (C rows, H2*W2 lanes), bf16 into the MXU, f32 accumulation.
# --------------------------------------------------------------------------
def _make_up_kernel(H2, W2, Cskip, Ccat_p, Cmid_p):
    S2 = H2 * W2
    PADL = _round_up(W2 + 1, 128)      # lane-aligned zero border (>= W2+1)
    Cimg = max(Ccat_p, Cmid_p)

    def kernel(x1e_ref, x2_ref, wup_ref, w1_ref, b1_ref, w2_ref, b2_ref,
               o_ref, img_sc, p_sc):
        # Lane-position helper for the horizontal tap masks.  Vertical taps are
        # handled entirely by the PADL-wide zero border (no yi mask needed).
        xi = jax.lax.broadcasted_iota(jnp.int32, (1, S2), 1) % W2

        # Re-zero ONLY the border columns.  Interior rows in use are fully
        # overwritten every step; done unconditionally (not @program_id==0) so
        # megacore sharding of the batch axis stays correct.
        zcol = jnp.zeros((Cimg, PADL), jnp.bfloat16)
        img_sc[:, 0:PADL] = zcol
        img_sc[:, PADL + S2:PADL + S2 + PADL] = zcol

        # ---- ConvTranspose2d(k=2,s=2) + bias + F.pad as ONE bf16 matmul ----
        # x1e rows = (kh,kw,ci)-expanded zero-interleaved x1 plus a ones row
        # (bias), so the dot directly yields the padded upsampled image in
        # channel-major layout.  wup's rows beyond Cup are zero, so the store
        # below also zero-fills the padded channel rows of the concat image.
        up = jnp.dot(wup_ref[...], x1e_ref[0],
                     preferred_element_type=jnp.float32)     # (Ccat_p-Cskip, S2)

        # ---- torch.cat([x2, up], dim=1), channel-major bf16, in VMEM ----
        img_sc[0:Cskip, PADL:PADL + S2] = x2_ref[0]
        img_sc[Cskip:Ccat_p, PADL:PADL + S2] = up.astype(jnp.bfloat16)

        def fill_taps(rows_p):
            # Transposed im2col (9*rows_p, S2): tap block t holds the image
            # shifted by (dy, dx).  Only horizontal taps (dx != 0) need an edge
            # mask; the zero border takes care of the vertical edges.
            for ky in range(3):
                for kx in range(3):
                    t = ky * 3 + kx
                    dy, dxx = ky - 1, kx - 1
                    delta = dy * W2 + dxx
                    sh = img_sc[0:rows_p, PADL + delta:PADL + delta + S2]
                    if dxx != 0:
                        edge = (xi > 0) if dxx < 0 else (xi < W2 - 1)
                        sh = jnp.where(edge, sh, 0).astype(jnp.bfloat16)
                    p_sc[t * rows_p:(t + 1) * rows_p, :] = sh

        # ---- conv1: single K=9*Ccat_p bf16 dot, BN scale folded into w1 ----
        fill_taps(Ccat_p)
        h = jnp.dot(w1_ref[...], p_sc[0:9 * Ccat_p, :],
                    preferred_element_type=jnp.float32)          # (Cmid_p, S2)
        h = jnp.maximum(h + b1_ref[...], 0.0)

        # img_sc is dead after fill_taps above -> reuse its rows for conv1's
        # output image (padded rows of h are exact zeros: zero w1/b1 rows).
        img_sc[0:Cmid_p, PADL:PADL + S2] = h.astype(jnp.bfloat16)

        # ---- conv2: single K=9*Cmid_p bf16 dot (p_sc reused; p1 is dead) ----
        fill_taps(Cmid_p)
        o = jnp.dot(w2_ref[...], p_sc[0:9 * Cmid_p, :],
                    preferred_element_type=jnp.float32)          # (Cout_p, S2)
        o_ref[0] = jnp.maximum(o + b2_ref[...], 0.0)             # lane-dense store

    return kernel, PADL, Cimg


# --------------------------------------------------------------------------
# Wrapper (NCHW, matching the PyTorch module)
# --------------------------------------------------------------------------
def up_forward(x1, x2, params):
    """Up.forward (bilinear=False).  x1: (N,Cin,H1,W1), x2: (N,Cin//2,H2,W2)."""
    N, Cin, H1, W1 = x1.shape
    _, Cskip, H2, W2 = x2.shape
    Cup = params["wt"].shape[1]
    Cmid = params["w1"].shape[0]
    Cout = params["w2"].shape[0]
    Ccat = Cskip + Cup
    S2 = H2 * W2
    dfy, dfx = H2 - 2 * H1, W2 - 2 * W1
    assert dfy >= 0 and dfx >= 0  # TODO(synk): negative diff (crop) not supported
    K1 = 4 * Cin + 1

    # Sublane-aligned channel padding: bf16 scratch tiles are 16 rows, f32
    # output tiles are 8 rows.  Padded weight/bias rows and cols are zero.
    Ccat_p = _round_up(Ccat, 16)
    Cmid_p = _round_up(Cmid, 16)
    Cout_p = _round_up(Cout, 8)
    Cup_p = Ccat_p - Cskip        # upconv rows incl. zero-fill of padded channels

    # Layout plumbing (input side, bf16): zero-interleaved nearest-upsample of
    # x1 split per (kh,kw) tap, plus a ones row (bias), padded to (H2,W2).
    up_nn = jnp.repeat(jnp.repeat(x1, 2, axis=2), 2, axis=3)    # (N,Cin,2H1,2W1)
    ypar = (jnp.arange(2 * H1) % 2)[:, None]
    xpar = (jnp.arange(2 * W1) % 2)[None, :]
    pieces = []
    for kh in range(2):
        for kw in range(2):
            m = ((ypar == kh) & (xpar == kw)).astype(x1.dtype)
            pieces.append(up_nn * m)
    pieces.append(jnp.ones((N, 1, 2 * H1, 2 * W1), x1.dtype))   # bias/mask row
    x1e = jnp.concatenate(pieces, axis=1)                       # (N,K1,2H1,2W1)
    x1e = jnp.pad(x1e, ((0, 0), (0, 0),
                        (dfy // 2, dfy - dfy // 2), (dfx // 2, dfx - dfx // 2)))
    x1e = x1e.reshape(N, K1, S2).astype(jnp.bfloat16)
    x2f = x2.reshape(N, Cskip, S2).astype(jnp.bfloat16)

    # Weights: PyTorch layouts -> kernel layouts, BN scale folded, zero-padded
    # to the aligned channel counts, bf16 for the MXU.
    wup = jnp.concatenate(
        [jnp.transpose(params["wt"], (1, 2, 3, 0)).reshape(Cup, 4 * Cin),
         params["bt"].reshape(Cup, 1)], axis=1)                     # (Cup, K1)
    wup = jnp.pad(wup, ((0, Cup_p - Cup), (0, 0))).astype(jnp.bfloat16)

    w1 = jnp.transpose(params["w1"] * params["s1"][:, None, None, None],
                       (0, 2, 3, 1))                         # (Cmid, 3, 3, Ccat)
    w1 = jnp.pad(w1, ((0, Cmid_p - Cmid), (0, 0), (0, 0), (0, Ccat_p - Ccat)))
    w1 = w1.reshape(Cmid_p, 9 * Ccat_p).astype(jnp.bfloat16)
    b1 = jnp.pad(params["sh1"], (0, Cmid_p - Cmid)).reshape(Cmid_p, 1)
    b1 = b1.astype(jnp.float32)

    w2 = jnp.transpose(params["w2"] * params["s2"][:, None, None, None],
                       (0, 2, 3, 1))                         # (Cout, 3, 3, Cmid)
    w2 = jnp.pad(w2, ((0, Cout_p - Cout), (0, 0), (0, 0), (0, Cmid_p - Cmid)))
    w2 = w2.reshape(Cout_p, 9 * Cmid_p).astype(jnp.bfloat16)
    b2 = jnp.pad(params["sh2"], (0, Cout_p - Cout)).reshape(Cout_p, 1)
    b2 = b2.astype(jnp.float32)

    kernel, PADL, Cimg = _make_up_kernel(H2, W2, Cskip, Ccat_p, Cmid_p)
    out = pl.pallas_call(
        kernel,
        out_shape=jax.ShapeDtypeStruct((N, Cout_p, S2), jnp.float32),
        grid=(N,),
        in_specs=[
            pl.BlockSpec((1, K1, S2), lambda n: (n, 0, 0)),
            pl.BlockSpec((1, Cskip, S2), lambda n: (n, 0, 0)),
            pl.BlockSpec((Cup_p, K1), lambda n: (0, 0)),
            pl.BlockSpec((Cmid_p, 9 * Ccat_p), lambda n: (0, 0)),
            pl.BlockSpec((Cmid_p, 1), lambda n: (0, 0)),
            pl.BlockSpec((Cout_p, 9 * Cmid_p), lambda n: (0, 0)),
            pl.BlockSpec((Cout_p, 1), lambda n: (0, 0)),
        ],
        out_specs=pl.BlockSpec((1, Cout_p, S2), lambda n: (n, 0, 0)),
        scratch_shapes=[
            pltpu.VMEM((Cimg, S2 + 2 * PADL), jnp.bfloat16),   # image (xc, then h)
            pltpu.VMEM((9 * Cimg, S2), jnp.bfloat16),          # im2col (p1, then p2)
        ],
        compiler_params=pltpu.CompilerParams(dimension_semantics=("parallel",)),
    )(x1e, x2f, wup, w1, b1, w2, b2)
    return out[:, :Cout, :].reshape(N, Cout, H2, W2)


# --------------------------------------------------------------------------
# Pure-JAX reference (NCHW), mirroring the kernel's bf16-MXU casts.
# --------------------------------------------------------------------------
def reference_forward(x1, x2, params):
    N, Cin, H1, W1 = x1.shape
    _, Cskip, H2, W2 = x2.shape
    Cup = params["wt"].shape[1]
    up = jnp.einsum("ncij,cokl->noikjl",
                    x1.astype(jnp.bfloat16), params["wt"].astype(jnp.bfloat16),
                    preferred_element_type=jnp.float32)
    up = up.reshape(N, Cup, 2 * H1, 2 * W1)
    up = up + params["bt"].astype(jnp.bfloat16).astype(jnp.float32)[:, None, None]
    dfy, dfx = H2 - 2 * H1, W2 - 2 * W1
    up = jnp.pad(up, ((0, 0), (0, 0),
                      (dfy // 2, dfy - dfy // 2), (dfx // 2, dfx - dfx // 2)))
    xc = jnp.concatenate([x2, up], axis=1)

    def conv_bn_relu(x, w_oihw, scale, shift):
        w = (w_oihw * scale[:, None, None, None]).astype(jnp.bfloat16)
        y = jax.lax.conv_general_dilated(
            x.astype(jnp.bfloat16), w, window_strides=(1, 1),
            padding=((1, 1), (1, 1)),
            dimension_numbers=("NCHW", "OIHW", "NCHW"),
            preferred_element_type=jnp.float32)
        return jnp.maximum(y + shift[:, None, None], 0.0)

    h = conv_bn_relu(xc, params["w1"], params["s1"], params["sh1"])
    return conv_bn_relu(h, params["w2"], params["s2"], params["sh2"])


# --------------------------------------------------------------------------
if __name__ == "__main__":
    IN_CH, OUT_CH = 8, 4            # Up(in_channels=8, out_channels=4)
    CUP, MID = IN_CH // 2, OUT_CH   # ConvTranspose out-ch, DoubleConv mid-ch
    N, H1, W1 = 2, 8, 8             # x1 (to be upsampled)
    H2, W2 = 16, 16                 # x2 (skip connection)

    key = jax.random.PRNGKey(0)
    keys = jax.random.split(key, 16)
    x1 = jax.random.normal(keys[0], (N, IN_CH, H1, W1), jnp.float32)
    x2 = jax.random.normal(keys[1], (N, IN_CH // 2, H2, W2), jnp.float32)

    eps = 1e-5

    def bn_fold(kg, kb, km, kv, c):
        gamma = 1.0 + 0.1 * jax.random.normal(kg, (c,), jnp.float32)
        beta = 0.1 * jax.random.normal(kb, (c,), jnp.float32)
        mean = 0.1 * jax.random.normal(km, (c,), jnp.float32)
        var = 1.0 + 0.5 * jax.random.uniform(kv, (c,), jnp.float32)
        scale = gamma / jnp.sqrt(var + eps)
        shift = beta - mean * scale
        return scale, shift

    # PyTorch-native parameter layouts
    wt = 0.2 * jax.random.normal(keys[2], (IN_CH, CUP, 2, 2), jnp.float32)
    bt = 0.1 * jax.random.normal(keys[3], (CUP,), jnp.float32)
    w1 = 0.2 * jax.random.normal(keys[4], (MID, IN_CH, 3, 3), jnp.float32)
    w2 = 0.2 * jax.random.normal(keys[5], (OUT_CH, MID, 3, 3), jnp.float32)
    s1, sh1 = bn_fold(keys[6], keys[7], keys[8], keys[9], MID)
    s2, sh2 = bn_fold(keys[10], keys[11], keys[12], keys[13], OUT_CH)

    params = dict(wt=wt, bt=bt, w1=w1, s1=s1, sh1=sh1, w2=w2, s2=s2, sh2=sh2)

    out = jax.jit(up_forward)(x1, x2, params)
    out = jax.block_until_ready(out)

    ref = reference_forward(x1, x2, params)
    assert out.shape == (N, OUT_CH, H2, W2), out.shape
    err = float(jnp.max(jnp.abs(out - ref)))
    assert jnp.allclose(out, ref, atol=2e-2, rtol=2e-2), err
    print("KERNEL_OK")
</pallas_src>

<mosaic_0001>
module attributes {stable_mosaic.version = 11 : i64} {
  func.func @kernel(%arg0: i32, %arg1: memref<1x33x256xbf16, #tpu.memory_space<vmem>>, %arg2: memref<1x4x256xbf16, #tpu.memory_space<vmem>>, %arg3: memref<12x33xbf16, #tpu.memory_space<vmem>>, %arg4: memref<16x144xbf16, #tpu.memory_space<vmem>>, %arg5: memref<16x1xf32, #tpu.memory_space<vmem>>, %arg6: memref<8x144xbf16, #tpu.memory_space<vmem>>, %arg7: memref<8x1xf32, #tpu.memory_space<vmem>>, %arg8: memref<1x8x256xf32, #tpu.memory_space<vmem>>, %arg9: memref<16x512xbf16, #tpu.memory_space<vmem>>, %arg10: memref<144x256xbf16, #tpu.memory_space<vmem>>) attributes {dimension_semantics = [#tpu.dimension_semantics<parallel>], iteration_bounds = array<i64: 2>, scalar_prefetch = 0 : i64, scratch_operands = 2 : i64, tpu.core_type = #tpu.core_type<tc>, window_params = [{transform_indices = @transform_0, window_bounds = array<i64: 1, 33, 256>}, {transform_indices = @transform_1, window_bounds = array<i64: 1, 4, 256>}, {pipeline_mode = #tpu.pipeline_mode<synchronous>, transform_indices = @transform_2, window_bounds = array<i64: 12, 33>}, {pipeline_mode = #tpu.pipeline_mode<synchronous>, transform_indices = @transform_3, window_bounds = array<i64: 16, 144>}, {pipeline_mode = #tpu.pipeline_mode<synchronous>, transform_indices = @transform_4, window_bounds = array<i64: 16, 1>}, {pipeline_mode = #tpu.pipeline_mode<synchronous>, transform_indices = @transform_5, window_bounds = array<i64: 8, 144>}, {pipeline_mode = #tpu.pipeline_mode<synchronous>, transform_indices = @transform_6, window_bounds = array<i64: 8, 1>}, {transform_indices = @transform_7, window_bounds = array<i64: 1, 8, 256>}]} {
    %0 = tpu.iota {dimensions = array<i32: 1>} : vector<1x256xi32>
    %c16_i32 = arith.constant 16 : i32
    %c0_i32 = arith.constant 0 : i32
    %1 = arith.cmpi eq, %c16_i32, %c0_i32 : i32
    %c1_i32 = arith.constant 1 : i32
    %2 = arith.select %1, %c1_i32, %c16_i32 : i32
    %3 = vector.broadcast %2 : i32 to vector<1x256xi32>
    %4 = arith.remsi %0, %3 : vector<1x256xi32>
    %c0_i32_0 = arith.constant 0 : i32
    %5 = vector.broadcast %c0_i32_0 : i32 to vector<1x256xi32>
    %6 = arith.cmpi ne, %4, %5 : vector<1x256xi32>
    %c0_i32_1 = arith.constant 0 : i32
    %7 = vector.broadcast %c0_i32_1 : i32 to vector<1x256xi32>
    %8 = arith.cmpi slt, %4, %7 : vector<1x256xi32>
    %c0_i32_2 = arith.constant 0 : i32
    %9 = arith.cmpi slt, %2, %c0_i32_2 : i32
    %10 = vector.broadcast %9 : i1 to vector<1x256xi1>
    %11 = vector.broadcast %10 : vector<1x256xi1> to vector<1x256xi1>
    %12 = arith.xori %8, %11 : vector<1x256xi1>
    %13 = arith.andi %12, %6 : vector<1x256xi1>
    %14 = vector.broadcast %2 : i32 to vector<1x256xi32>
    %15 = arith.addi %4, %14 : vector<1x256xi32>
    %16 = arith.select %13, %15, %4 : vector<1x256xi1>, vector<1x256xi32>
    %cst = arith.constant 0.000000e+00 : bf16
    %17 = vector.broadcast %cst : bf16 to vector<16x128xbf16>
    %c0 = arith.constant 0 : index
    %c0_3 = arith.constant 0 : index
    %18 = vector.load %arg9[%c0, %c0_3] : memref<16x512xbf16, #tpu.memory_space<vmem>>, vector<16x128xbf16>
    tpu.vector_store %arg9[%c0, %c0_3], %17 {strides = array<i32>} : memref<16x512xbf16, #tpu.memory_space<vmem>>, vector<16x128xbf16>,
    %c0_4 = arith.constant 0 : index
    %c384 = arith.constant 384 : index
    %19 = vector.load %arg9[%c0_4, %c384] : memref<16x512xbf16, #tpu.memory_space<vmem>>, vector<16x128xbf16>
    tpu.vector_store %arg9[%c0_4, %c384], %17 {strides = array<i32>} : memref<16x512xbf16, #tpu.memory_space<vmem>>, vector<16x128xbf16>,
    %c0_5 = arith.constant 0 : index
    %c0_6 = arith.constant 0 : index
    %20 = vector.load %arg3[%c0_5, %c0_6] : memref<12x33xbf16, #tpu.memory_space<vmem>>, vector<12x33xbf16>
    %c0_7 = arith.constant 0 : index
    %c0_8 = arith.constant 0 : index
    %c0_9 = arith.constant 0 : index
    %21 = vector.load %arg1[%c0_7, %c0_8, %c0_9] : memref<1x33x256xbf16, #tpu.memory_space<vmem>>, vector<1x33x256xbf16>
    %22 = vector.shape_cast %21 : vector<1x33x256xbf16> to vector<33x256xbf16>
    %cst_10 = arith.constant dense<0.000000e+00> : vector<12x256xf32>
    %23 = tpu.matmul %20, %22, %cst_10 {dimension_numbers = #tpu.dot_dimension_numbers<[1], [0], [0], [1], [0, 0, 1, 1], [], []>} : vector<12x33xbf16>, vector<33x256xbf16>, vector<12x256xf32> -> vector<12x256xf32>
    %c0_11 = arith.constant 0 : index
    %c0_12 = arith.constant 0 : index
    %c0_13 = arith.constant 0 : index
    %24 = vector.load %arg2[%c0_11, %c0_12, %c0_13] : memref<1x4x256xbf16, #tpu.memory_space<vmem>>, vector<1x4x256xbf16>
    %25 = vector.shape_cast %24 : vector<1x4x256xbf16> to vector<4x256xbf16>
    %c0_14 = arith.constant 0 : index
    %c128 = arith.constant 128 : index
    %26 = vector.load %arg9[%c0_14, %c128] : memref<16x512xbf16, #tpu.memory_space<vmem>>, vector<4x256xbf16>
    tpu.vector_store %arg9[%c0_14, %c128], %25 {strides = array<i32>} : memref<16x512xbf16, #tpu.memory_space<vmem>>, vector<4x256xbf16>,
    %27 = arith.truncf %23 : vector<12x256xf32> to vector<12x256xbf16>
    %c4 = arith.constant 4 : index
    %c128_15 = arith.constant 128 : index
    %28 = vector.load %arg9[%c4, %c128_15] : memref<16x512xbf16, #tpu.memory_space<vmem>>, vector<12x256xbf16>
    tpu.vector_store %arg9[%c4, %c128_15], %27 {strides = array<i32>} : memref<16x512xbf16, #tpu.memory_space<vmem>>, vector<12x256xbf16>,
    %c0_16 = arith.constant 0 : index
    %c111 = arith.constant 111 : index
    %29 = vector.load %arg9[%c0_16, %c111] : memref<16x512xbf16, #tpu.memory_space<vmem>>, vector<16x256xbf16>
    %c0_i32_17 = arith.constant 0 : i32
    %30 = vector.broadcast %c0_i32_17 : i32 to vector<1x256xi32>
    %31 = arith.cmpi sgt, %16, %30 : vector<1x256xi32>
    %c0_i32_18 = arith.constant 0 : i32
    %32 = arith.sitofp %c0_i32_18 : i32 to bf16
    %33 = vector.shape_cast %31 : vector<1x256xi1> to vector<1x256xi1>
    %34 = vector.broadcast %33 : vector<1x256xi1> to vector<16x256xi1>
    %35 = vector.broadcast %32 : bf16 to vector<16x256xbf16>
    %36 = arith.select %34, %29, %35 : vector<16x256xi1>, vector<16x256xbf16>
    %c0_19 = arith.constant 0 : index
    %c0_20 = arith.constant 0 : index
    %37 = vector.load %arg10[%c0_19, %c0_20] : memref<144x256xbf16, #tpu.memory_space<vmem>>, vector<16x256xbf16>
    tpu.vector_store %arg10[%c0_19, %c0_20], %36 {strides = array<i32>} : memref<144x256xbf16, #tpu.memory_space<vmem>>, vector<16x256xbf16>,
    %c0_21 = arith.constant 0 : index
    %c112 = arith.constant 112 : index
    %38 = vector.load %arg9[%c0_21, %c112] : memref<16x512xbf16, #tpu.memory_space<vmem>>, vector<16x256xbf16>
    %c16 = arith.constant 16 : index
    %c0_22 = arith.constant 0 : index
    %39 = vector.load %arg10[%c16, %c0_22] : memref<144x256xbf16, #tpu.memory_space<vmem>>, vector<16x256xbf16>
    tpu.vector_store %arg10[%c16, %c0_22], %38 {strides = array<i32>} : memref<144x256xbf16, #tpu.memory_space<vmem>>, vector<16x256xbf16>,
    %c0_23 = arith.constant 0 : index
    %c113 = arith.constant 113 : index
    %40 = vector.load %arg9[%c0_23, %c113] : memref<16x512xbf16, #tpu.memory_space<vmem>>, vector<16x256xbf16>
    %c15_i32 = arith.constant 15 : i32
    %41 = vector.broadcast %c15_i32 : i32 to vector<1x256xi32>
    %42 = arith.cmpi slt, %16, %41 : vector<1x256xi32>
    %c0_i32_24 = arith.constant 0 : i32
    %43 = arith.sitofp %c0_i32_24 : i32 to bf16
    %44 = vector.shape_cast %42 : vector<1x256xi1> to vector<1x256xi1>
    %45 = vector.broadcast %44 : vector<1x256xi1> to vector<16x256xi1>
    %46 = vector.broadcast %43 : bf16 to vector<16x256xbf16>
    %47 = arith.select %45, %40, %46 : vector<16x256xi1>, vector<16x256xbf16>
    %c32 = arith.constant 32 : index
    %c0_25 = arith.constant 0 : index
    %48 = vector.load %arg10[%c32, %c0_25] : memref<144x256xbf16, #tpu.memory_space<vmem>>, vector<16x256xbf16>
    tpu.vector_store %arg10[%c32, %c0_25], %47 {strides = array<i32>} : memref<144x256xbf16, #tpu.memory_space<vmem>>, vector<16x256xbf16>,
    %c0_26 = arith.constant 0 : index
    %c127 = arith.constant 127 : index
    %49 = vector.load %arg9[%c0_26, %c127] : memref<16x512xbf16, #tpu.memory_space<vmem>>, vector<16x256xbf16>
    %c0_i32_27 = arith.constant 0 : i32
    %50 = vector.broadcast %c0_i32_27 : i32 to vector<1x256xi32>
    %51 = arith.cmpi sgt, %16, %50 : vector<1x256xi32>
    %c0_i32_28 = arith.constant 0 : i32
    %52 = arith.sitofp %c0_i32_28 : i32 to bf16
    %53 = vector.shape_cast %51 : vector<1x256xi1> to vector<1x256xi1>
    %54 = vector.broadcast %53 : vector<1x256xi1> to vector<16x256xi1>
    %55 = vector.broadcast %52 : bf16 to vector<16x256xbf16>
    %56 = arith.select %54, %49, %55 : vector<16x256xi1>, vector<16x256xbf16>
    %c48 = arith.constant 48 : index
    %c0_29 = arith.constant 0 : index
    %57 = vector.load %arg10[%c48, %c0_29] : memref<144x256xbf16, #tpu.memory_space<vmem>>, vector<16x256xbf16>
    tpu.vector_store %arg10[%c48, %c0_29], %56 {strides = array<i32>} : memref<144x256xbf16, #tpu.memory_space<vmem>>, vector<16x256xbf16>,
    %c0_30 = arith.constant 0 : index
    %c128_31 = arith.constant 128 : index
    %58 = vector.load %arg9[%c0_30, %c128_31] : memref<16x512xbf16, #tpu.memory_space<vmem>>, vector<16x256xbf16>
    %c64 = arith.constant 64 : index
    %c0_32 = arith.constant 0 : index
    %59 = vector.load %arg10[%c64, %c0_32] : memref<144x256xbf16, #tpu.memory_space<vmem>>, vector<16x256xbf16>
    tpu.vector_store %arg10[%c64, %c0_32], %58 {strides = array<i32>} : memref<144x256xbf16, #tpu.memory_space<vmem>>, vector<16x256xbf16>,
    %c0_33 = arith.constant 0 : index
    %c129 = arith.constant 129 : index
    %60 = vector.load %arg9[%c0_33, %c129] : memref<16x512xbf16, #tpu.memory_space<vmem>>, vector<16x256xbf16>
    %c15_i32_34 = arith.constant 15 : i32
    %61 = vector.broadcast %c15_i32_34 : i32 to vector<1x256xi32>
    %62 = arith.cmpi slt, %16, %61 : vector<1x256xi32>
    %c0_i32_35 = arith.constant 0 : i32
    %63 = arith.sitofp %c0_i32_35 : i32 to bf16
    %64 = vector.shape_cast %62 : vector<1x256xi1> to vector<1x256xi1>
    %65 = vector.broadcast %64 : vector<1x256xi1> to vector<16x256xi1>
    %66 = vector.broadcast %63 : bf16 to vector<16x256xbf16>
    %67 = arith.select %65, %60, %66 : vector<16x256xi1>, vector<16x256xbf16>
    %c80 = arith.constant 80 : index
    %c0_36 = arith.constant 0 : index
    %68 = vector.load %arg10[%c80, %c0_36] : memref<144x256xbf16, #tpu.memory_space<vmem>>, vector<16x256xbf16>
    tpu.vector_store %arg10[%c80, %c0_36], %67 {strides = array<i32>} : memref<144x256xbf16, #tpu.memory_space<vmem>>, vector<16x256xbf16>,
    %c0_37 = arith.constant 0 : index
    %c143 = arith.constant 143 : index
    %69 = vector.load %arg9[%c0_37, %c143] : memref<16x512xbf16, #tpu.memory_space<vmem>>, vector<16x256xbf16>
    %c0_i32_38 = arith.constant 0 : i32
    %70 = vector.broadcast %c0_i32_38 : i32 to vector<1x256xi32>
    %71 = arith.cmpi sgt, %16, %70 : vector<1x256xi32>
    %c0_i32_39 = arith.constant 0 : i32
    %72 = arith.sitofp %c0_i32_39 : i32 to bf16
    %73 = vector.shape_cast %71 : vector<1x256xi1> to vector<1x256xi1>
    %74 = vector.broadcast %73 : vector<1x256xi1> to vector<16x256xi1>
    %75 = vector.broadcast %72 : bf16 to vector<16x256xbf16>
    %76 = arith.select %74, %69, %75 : vector<16x256xi1>, vector<16x256xbf16>
    %c96 = arith.constant 96 : index
    %c0_40 = arith.constant 0 : index
    %77 = vector.load %arg10[%c96, %c0_40] : memref<144x256xbf16, #tpu.memory_space<vmem>>, vector<16x256xbf16>
    tpu.vector_store %arg10[%c96, %c0_40], %76 {strides = array<i32>} : memref<144x256xbf16, #tpu.memory_space<vmem>>, vector<16x256xbf16>,
    %c0_41 = arith.constant 0 : index
    %c144 = arith.constant 144 : index
    %78 = vector.load %arg9[%c0_41, %c144] : memref<16x512xbf16, #tpu.memory_space<vmem>>, vector<16x256xbf16>
    %c112_42 = arith.constant 112 : index
    %c0_43 = arith.constant 0 : index
    %79 = vector.load %arg10[%c112_42, %c0_43] : memref<144x256xbf16, #tpu.memory_space<vmem>>, vector<16x256xbf16>
    tpu.vector_store %arg10[%c112_42, %c0_43], %78 {strides = array<i32>} : memref<144x256xbf16, #tpu.memory_space<vmem>>, vector<16x256xbf16>,
    %c0_44 = arith.constant 0 : index
    %c145 = arith.constant 145 : index
    %80 = vector.load %arg9[%c0_44, %c145] : memref<16x512xbf16, #tpu.memory_space<vmem>>, vector<16x256xbf16>
    %c15_i32_45 = arith.constant 15 : i32
    %81 = vector.broadcast %c15_i32_45 : i32 to vector<1x256xi32>
    %82 = arith.cmpi slt, %16, %81 : vector<1x256xi32>
    %c0_i32_46 = arith.constant 0 : i32
    %83 = arith.sitofp %c0_i32_46 : i32 to bf16
    %84 = vector.shape_cast %82 : vector<1x256xi1> to vector<1x256xi1>
    %85 = vector.broadcast %84 : vector<1x256xi1> to vector<16x256xi1>
    %86 = vector.broadcast %83 : bf16 to vector<16x256xbf16>
    %87 = arith.select %85, %80, %86 : vector<16x256xi1>, vector<16x256xbf16>
    %c128_47 = arith.constant 128 : index
    %c0_48 = arith.constant 0 : index
    %88 = vector.load %arg10[%c128_47, %c0_48] : memref<144x256xbf16, #tpu.memory_space<vmem>>, vector<16x256xbf16>
    tpu.vector_store %arg10[%c128_47, %c0_48], %87 {strides = array<i32>} : memref<144x256xbf16, #tpu.memory_space<vmem>>, vector<16x256xbf16>,
    %c0_49 = arith.constant 0 : index
    %c0_50 = arith.constant 0 : index
    %89 = vector.load %arg4[%c0_49, %c0_50] : memref<16x144xbf16, #tpu.memory_space<vmem>>, vector<16x144xbf16>
    %c0_51 = arith.constant 0 : index
    %c0_52 = arith.constant 0 : index
    %90 = vector.load %arg10[%c0_51, %c0_52] : memref<144x256xbf16, #tpu.memory_space<vmem>>, vector<144x256xbf16>
    %cst_53 = arith.constant dense<0.000000e+00> : vector<16x256xf32>
    %91 = tpu.matmul %89, %90, %cst_53 {dimension_numbers = #tpu.dot_dimension_numbers<[1], [0], [0], [1], [0, 0, 1, 1], [], []>} : vector<16x144xbf16>, vector<144x256xbf16>, vector<16x256xf32> -> vector<16x256xf32>
    %c0_54 = arith.constant 0 : index
    %c0_55 = arith.constant 0 : index
    %92 = vector.load %arg5[%c0_54, %c0_55] : memref<16x1xf32, #tpu.memory_space<vmem>>, vector<16x1xf32>
    %93 = vector.broadcast %92 : vector<16x1xf32> to vector<16x256xf32>
    %94 = arith.addf %91, %93 : vector<16x256xf32>
    %cst_56 = arith.constant 0.000000e+00 : f32
    %95 = vector.broadcast %cst_56 : f32 to vector<16x256xf32>
    %96 = arith.maximumf %94, %95 : vector<16x256xf32>
    %97 = arith.truncf %96 : vector<16x256xf32> to vector<16x256xbf16>
    %c0_57 = arith.constant 0 : index
    %c128_58 = arith.constant 128 : index
    %98 = vector.load %arg9[%c0_57, %c128_58] : memref<16x512xbf16, #tpu.memory_space<vmem>>, vector<16x256xbf16>
    tpu.vector_store %arg9[%c0_57, %c128_58], %97 {strides = array<i32>} : memref<16x512xbf16, #tpu.memory_space<vmem>>, vector<16x256xbf16>,
    %c0_59 = arith.constant 0 : index
    %c111_60 = arith.constant 111 : index
    %99 = vector.load %arg9[%c0_59, %c111_60] : memref<16x512xbf16, #tpu.memory_space<vmem>>, vector<16x256xbf16>
    %c0_i32_61 = arith.constant 0 : i32
    %100 = vector.broadcast %c0_i32_61 : i32 to vector<1x256xi32>
    %101 = arith.cmpi sgt, %16, %100 : vector<1x256xi32>
    %c0_i32_62 = arith.constant 0 : i32
    %102 = arith.sitofp %c0_i32_62 : i32 to bf16
    %103 = vector.shape_cast %101 : vector<1x256xi1> to vector<1x256xi1>
    %104 = vector.broadcast %103 : vector<1x256xi1> to vector<16x256xi1>
    %105 = vector.broadcast %102 : bf16 to vector<16x256xbf16>
    %106 = arith.select %104, %99, %105 : vector<16x256xi1>, vector<16x256xbf16>
    %c0_63 = arith.constant 0 : index
    %c0_64 = arith.constant 0 : index
    %107 = vector.load %arg10[%c0_63, %c0_64] : memref<144x256xbf16, #tpu.memory_space<vmem>>, vector<16x256xbf16>
    tpu.vector_store %arg10[%c0_63, %c0_64], %106 {strides = array<i32>} : memref<144x256xbf16, #tpu.memory_space<vmem>>, vector<16x256xbf16>,
    %c0_65 = arith.constant 0 : index
    %c112_66 = arith.constant 112 : index
    %108 = vector.load %arg9[%c0_65, %c112_66] : memref<16x512xbf16, #tpu.memory_space<vmem>>, vector<16x256xbf16>
    %c16_67 = arith.constant 16 : index
    %c0_68 = arith.constant 0 : index
    %109 = vector.load %arg10[%c16_67, %c0_68] : memref<144x256xbf16, #tpu.memory_space<vmem>>, vector<16x256xbf16>
    tpu.vector_store %arg10[%c16_67, %c0_68], %108 {strides = array<i32>} : memref<144x256xbf16, #tpu.memory_space<vmem>>, vector<16x256xbf16>,
    %c0_69 = arith.constant 0 : index
    %c113_70 = arith.constant 113 : index
    %110 = vector.load %arg9[%c0_69, %c113_70] : memref<16x512xbf16, #tpu.memory_space<vmem>>, vector<16x256xbf16>
    %c15_i32_71 = arith.constant 15 : i32
    %111 = vector.broadcast %c15_i32_71 : i32 to vector<1x256xi32>
    %112 = arith.cmpi slt, %16, %111 : vector<1x256xi32>
    %c0_i32_72 = arith.constant 0 : i32
    %113 = arith.sitofp %c0_i32_72 : i32 to bf16
    %114 = vector.shape_cast %112 : vector<1x256xi1> to vector<1x256xi1>
    %115 = vector.broadcast %114 : vector<1x256xi1> to vector<16x256xi1>
    %116 = vector.broadcast %113 : bf16 to vector<16x256xbf16>
    %117 = arith.select %115, %110, %116 : vector<16x256xi1>, vector<16x256xbf16>
    %c32_73 = arith.constant 32 : index
    %c0_74 = arith.constant 0 : index
    %118 = vector.load %arg10[%c32_73, %c0_74] : memref<144x256xbf16, #tpu.memory_space<vmem>>, vector<16x256xbf16>
    tpu.vector_store %arg10[%c32_73, %c0_74], %117 {strides = array<i32>} : memref<144x256xbf16, #tpu.memory_space<vmem>>, vector<16x256xbf16>,
    %c0_75 = arith.constant 0 : index
    %c127_76 = arith.constant 127 : index
    %119 = vector.load %arg9[%c0_75, %c127_76] : memref<16x512xbf16, #tpu.memory_space<vmem>>, vector<16x256xbf16>
    %c0_i32_77 = arith.constant 0 : i32
    %120 = vector.broadcast %c0_i32_77 : i32 to vector<1x256xi32>
    %121 = arith.cmpi sgt, %16, %120 : vector<1x256xi32>
    %c0_i32_78 = arith.constant 0 : i32
    %122 = arith.sitofp %c0_i32_78 : i32 to bf16
    %123 = vector.shape_cast %121 : vector<1x256xi1> to vector<1x256xi1>
    %124 = vector.broadcast %123 : vector<1x256xi1> to vector<16x256xi1>
    %125 = vector.broadcast %122 : bf16 to vector<16x256xbf16>
    %126 = arith.select %124, %119, %125 : vector<16x256xi1>, vector<16x256xbf16>
    %c48_79 = arith.constant 48 : index
    %c0_80 = arith.constant 0 : index
    %127 = vector.load %arg10[%c48_79, %c0_80] : memref<144x256xbf16, #tpu.memory_space<vmem>>, vector<16x256xbf16>
    tpu.vector_store %arg10[%c48_79, %c0_80], %126 {strides = array<i32>} : memref<144x256xbf16, #tpu.memory_space<vmem>>, vector<16x256xbf16>,
    %c0_81 = arith.constant 0 : index
    %c128_82 = arith.constant 128 : index
    %128 = vector.load %arg9[%c0_81, %c128_82] : memref<16x512xbf16, #tpu.memory_space<vmem>>, vector<16x256xbf16>
    %c64_83 = arith.constant 64 : index
    %c0_84 = arith.constant 0 : index
    %129 = vector.load %arg10[%c64_83, %c0_84] : memref<144x256xbf16, #tpu.memory_space<vmem>>, vector<16x256xbf16>
    tpu.vector_store %arg10[%c64_83, %c0_84], %128 {strides = array<i32>} : memref<144x256xbf16, #tpu.memory_space<vmem>>, vector<16x256xbf16>,
    %c0_85 = arith.constant 0 : index
    %c129_86 = arith.constant 129 : index
    %130 = vector.load %arg9[%c0_85, %c129_86] : memref<16x512xbf16, #tpu.memory_space<vmem>>, vector<16x256xbf16>
    %c15_i32_87 = arith.constant 15 : i32
    %131 = vector.broadcast %c15_i32_87 : i32 to vector<1x256xi32>
    %132 = arith.cmpi slt, %16, %131 : vector<1x256xi32>
    %c0_i32_88 = arith.constant 0 : i32
    %133 = arith.sitofp %c0_i32_88 : i32 to bf16
    %134 = vector.shape_cast %132 : vector<1x256xi1> to vector<1x256xi1>
    %135 = vector.broadcast %134 : vector<1x256xi1> to vector<16x256xi1>
    %136 = vector.broadcast %133 : bf16 to vector<16x256xbf16>
    %137 = arith.select %135, %130, %136 : vector<16x256xi1>, vector<16x256xbf16>
    %c80_89 = arith.constant 80 : index
    %c0_90 = arith.constant 0 : index
    %138 = vector.load %arg10[%c80_89, %c0_90] : memref<144x256xbf16, #tpu.memory_space<vmem>>, vector<16x256xbf16>
    tpu.vector_store %arg10[%c80_89, %c0_90], %137 {strides = array<i32>} : memref<144x256xbf16, #tpu.memory_space<vmem>>, vector<16x256xbf16>,
    %c0_91 = arith.constant 0 : index
    %c143_92 = arith.constant 143 : index
    %139 = vector.load %arg9[%c0_91, %c143_92] : memref<16x512xbf16, #tpu.memory_space<vmem>>, vector<16x256xbf16>
    %c0_i32_93 = arith.constant 0 : i32
    %140 = vector.broadcast %c0_i32_93 : i32 to vector<1x256xi32>
    %141 = arith.cmpi sgt, %16, %140 : vector<1x256xi32>
    %c0_i32_94 = arith.constant 0 : i32
    %142 = arith.sitofp %c0_i32_94 : i32 to bf16
    %143 = vector.shape_cast %141 : vector<1x256xi1> to vector<1x256xi1>
    %144 = vector.broadcast %143 : vector<1x256xi1> to vector<16x256xi1>
    %145 = vector.broadcast %142 : bf16 to vector<16x256xbf16>
    %146 = arith.select %144, %139, %145 : vector<16x256xi1>, vector<16x256xbf16>
    %c96_95 = arith.constant 96 : index
    %c0_96 = arith.constant 0 : index
    %147 = vector.load %arg10[%c96_95, %c0_96] : memref<144x256xbf16, #tpu.memory_space<vmem>>, vector<16x256xbf16>
    tpu.vector_store %arg10[%c96_95, %c0_96], %146 {strides = array<i32>} : memref<144x256xbf16, #tpu.memory_space<vmem>>, vector<16x256xbf16>,
    %c0_97 = arith.constant 0 : index
    %c144_98 = arith.constant 144 : index
    %148 = vector.load %arg9[%c0_97, %c144_98] : memref<16x512xbf16, #tpu.memory_space<vmem>>, vector<16x256xbf16>
    %c112_99 = arith.constant 112 : index
    %c0_100 = arith.constant 0 : index
    %149 = vector.load %arg10[%c112_99, %c0_100] : memref<144x256xbf16, #tpu.memory_space<vmem>>, vector<16x256xbf16>
    tpu.vector_store %arg10[%c112_99, %c0_100], %148 {strides = array<i32>} : memref<144x256xbf16, #tpu.memory_space<vmem>>, vector<16x256xbf16>,
    %c0_101 = arith.constant 0 : index
    %c145_102 = arith.constant 145 : index
    %150 = vector.load %arg9[%c0_101, %c145_102] : memref<16x512xbf16, #tpu.memory_space<vmem>>, vector<16x256xbf16>
    %c15_i32_103 = arith.constant 15 : i32
    %151 = vector.broadcast %c15_i32_103 : i32 to vector<1x256xi32>
    %152 = arith.cmpi slt, %16, %151 : vector<1x256xi32>
    %c0_i32_104 = arith.constant 0 : i32
    %153 = arith.sitofp %c0_i32_104 : i32 to bf16
    %154 = vector.shape_cast %152 : vector<1x256xi1> to vector<1x256xi1>
    %155 = vector.broadcast %154 : vector<1x256xi1> to vector<16x256xi1>
    %156 = vector.broadcast %153 : bf16 to vector<16x256xbf16>
    %157 = arith.select %155, %150, %156 : vector<16x256xi1>, vector<16x256xbf16>
    %c128_105 = arith.constant 128 : index
    %c0_106 = arith.constant 0 : index
    %158 = vector.load %arg10[%c128_105, %c0_106] : memref<144x256xbf16, #tpu.memory_space<vmem>>, vector<16x256xbf16>
    tpu.vector_store %arg10[%c128_105, %c0_106], %157 {strides = array<i32>} : memref<144x256xbf16, #tpu.memory_space<vmem>>, vector<16x256xbf16>,
    %c0_107 = arith.constant 0 : index
    %c0_108 = arith.constant 0 : index
    %159 = vector.load %arg6[%c0_107, %c0_108] : memref<8x144xbf16, #tpu.memory_space<vmem>>, vector<8x144xbf16>
    %c0_109 = arith.constant 0 : index
    %c0_110 = arith.constant 0 : index
    %160 = vector.load %arg10[%c0_109, %c0_110] : memref<144x256xbf16, #tpu.memory_space<vmem>>, vector<144x256xbf16>
    %cst_111 = arith.constant dense<0.000000e+00> : vector<8x256xf32>
    %161 = tpu.matmul %159, %160, %cst_111 {dimension_numbers = #tpu.dot_dimension_numbers<[1], [0], [0], [1], [0, 0, 1, 1], [], []>} : vector<8x144xbf16>, vector<144x256xbf16>, vector<8x256xf32> -> vector<8x256xf32>
    %c0_112 = arith.constant 0 : index
    %c0_113 = arith.constant 0 : index
    %162 = vector.load %arg7[%c0_112, %c0_113] : memref<8x1xf32, #tpu.memory_space<vmem>>, vector<8x1xf32>
    %163 = vector.broadcast %162 : vector<8x1xf32> to vector<8x256xf32>
    %164 = arith.addf %161, %163 : vector<8x256xf32>
    %cst_114 = arith.constant 0.000000e+00 : f32
    %165 = vector.broadcast %cst_114 : f32 to vector<8x256xf32>
    %166 = arith.maximumf %164, %165 : vector<8x256xf32>
    %c0_115 = arith.constant 0 : index
    %c0_116 = arith.constant 0 : index
    %c0_117 = arith.constant 0 : index
    %167 = vector.load %arg8[%c0_115, %c0_116, %c0_117] : memref<1x8x256xf32, #tpu.memory_space<vmem>>, vector<1x8x256xf32>
    %168 = vector.shape_cast %167 : vector<1x8x256xf32> to vector<8x256xf32>
    %169 = vector.shape_cast %166 : vector<8x256xf32> to vector<1x8x256xf32>
    tpu.vector_store %arg8[%c0_115, %c0_116, %c0_117], %169 {strides = array<i32>} : memref<1x8x256xf32, #tpu.memory_space<vmem>>, vector<1x8x256xf32>,
    return
  }
  func.func @transform_0(%arg0: i32) -> (i32, i32, i32) {
    %c0_i32 = arith.constant 0 : i32
    %c0_i32_0 = arith.constant 0 : i32
    %c0_i32_1 = arith.constant 0 : i32
    return %arg0, %c0_i32, %c0_i32_0 : i32, i32, i32
  }
  func.func @transform_1(%arg0: i32) -> (i32, i32, i32) {
    %c0_i32 = arith.constant 0 : i32
    %c0_i32_0 = arith.constant 0 : i32
    %c0_i32_1 = arith.constant 0 : i32
    return %arg0, %c0_i32, %c0_i32_0 : i32, i32, i32
  }
  func.func @transform_2(%arg0: i32) -> (i32, i32) {
    %c0_i32 = arith.constant 0 : i32
    %c0_i32_0 = arith.constant 0 : i32
    %c0_i32_1 = arith.constant 0 : i32
    return %c0_i32, %c0_i32_0 : i32, i32
  }
  func.func @transform_3(%arg0: i32) -> (i32, i32) {
    %c0_i32 = arith.constant 0 : i32
    %c0_i32_0 = arith.constant 0 : i32
    %c0_i32_1 = arith.constant 0 : i32
    return %c0_i32, %c0_i32_0 : i32, i32
  }
  func.func @transform_4(%arg0: i32) -> (i32, i32) {
    %c0_i32 = arith.constant 0 : i32
    %c0_i32_0 = arith.constant 0 : i32
    %c0_i32_1 = arith.constant 0 : i32
    return %c0_i32, %c0_i32_0 : i32, i32
  }
  func.func @transform_5(%arg0: i32) -> (i32, i32) {
    %c0_i32 = arith.constant 0 : i32
    %c0_i32_0 = arith.constant 0 : i32
    %c0_i32_1 = arith.constant 0 : i32
    return %c0_i32, %c0_i32_0 : i32, i32
  }
  func.func @transform_6(%arg0: i32) -> (i32, i32) {
    %c0_i32 = arith.constant 0 : i32
    %c0_i32_0 = arith.constant 0 : i32
    %c0_i32_1 = arith.constant 0 : i32
    return %c0_i32, %c0_i32_0 : i32, i32
  }
  func.func @transform_7(%arg0: i32) -> (i32, i32, i32) {
    %c0_i32 = arith.constant 0 : i32
    %c0_i32_0 = arith.constant 0 : i32
    %c0_i32_1 = arith.constant 0 : i32
    return %arg0, %c0_i32, %c0_i32_0 : i32, i32, i32
  }
}

</mosaic_0001>

<bundles_post_ra>
// kernel: up_forward.1
= control target key start
LH: loop header
LB: loop body
LE: loop exit
PB: predicated region body
PF: predicated region fallthrough
CT: control target
= control target key end

     0   :  { %s1230_s24 = smov 0   ;;  %s1559_s0 = inlined_call_operand.vmem [shape: bf16[2,33,256], index: 0, kind: input, shape index: {}]   ;;  %s1560_s1 = inlined_call_operand.vmem [shape: bf16[2,4,256], index: 1, kind: input, shape index: {}]   ;;  %s1561_s2 = inlined_call_operand.vmem [shape: bf16[12,33], index: 2, kind: input, shape index: {}]   ;;  %s1562_s3 = inlined_call_operand.vmem [shape: bf16[16,144], index: 3, kind: input, shape index: {}]   ;;  %s1563_s4 = inlined_call_operand.vmem [shape: f32[16,1], index: 4, kind: input, shape index: {}]   ;;  %s1564_s5 = inlined_call_operand.vmem [shape: bf16[8,144], index: 5, kind: input, shape index: {}]   ;;  %s1565_s6 = inlined_call_operand.vmem [shape: f32[8,1], index: 6, kind: input, shape index: {}]   ;;  %s1566_s7 = inlined_call_operand.vmem [shape: f32[2,8,256], index: 7, kind: output, shape index: {}]  }
   0x1 LB: > { %s1110_s25 = sadd.s32 4294967295, %s1179_s24   ;;  %p1114_p0 = scmp.ge.s32.totalorder %s1179_s24, 1  ;;  %s1179_s24 = sphi %s1230_s24, %s17_s24  }
   0x2   : > { %p247_p1 = scmp.lt.s32.totalorder %s1179_s24, 3 }
   0x4   : > { %p248_p2 = pnand %p1114_p0, %p247_p1 }
   0x5   : > { %p284_p3 = scmp.lt.s32.totalorder (!%p248_p2), %s1110_s25, 1  ;;  %v302_v0 = vlaneseq (!%p248_p2)  ;;  %v1181_v1 = vmov (!%p248_p2), 0   ;;  %vm372_vm0 = vcmask (!%p248_p2), 1040384   ;;  %s1182_s11 = smov (!%p248_p2), 113   ;;  %v1167_v30 = vld [vmem:[%s1561_s2] sm:$0x3f] (!%p248_p2)  }
   0x6   : > { %251 = sbr.rel (%p248_p2) target bundleno = 1012 (0x3f4), region = 48  ;;  %413 = vmatprep.mubr.bf16.mxu0 (!%p248_p2), %v1181_v1  ;;  %1158 = vset.pattern.permute.xlu1 (!%p248_p2), %v1181_v1  ;;  %v374_v17 = vsel (!%p248_p2), %vm372_vm0, 65535, %v1181_v1  ;;  %s1183_s12 = smov (!%p248_p2), 111   ;;  %vm368_vm7 = vcmask (!%p248_p2), 269312   ;;  %vm471_vm8 = vcmask (!%p248_p2), 908288   ;;  %vm568_vm9 = vcmask (!%p248_p2), 1039360  }
   0x7   : > { %v303_v2 = vand.u32 (!%p248_p2), 127, %v302_v0  ;;  %v460_v3 = vshrl.u32 (!%p248_p2), %v302_v0, 7  ;;  %1157 = vset.pattern.permute.xlu0 (!%p248_p2), %v1181_v1  ;;  %s1184_s15 = smov (!%p248_p2), 127   ;;  %s1185_s16 = smov (!%p248_p2), 1   ;;  %vm537_vm10 = vcmask (!%p248_p2), 924672  }
   0x8   : > { %s1186_s17 = smov (!%p248_p2), 15   ;;  %s1187_s18 = smov (!%p248_p2), 17  }
   0x9   : > { %v304_v4 = vadd.s32 (!%p248_p2), 128, %v303_v2  ;;  %v309_v5 = vand.u32 (!%p248_p2), 15, %v303_v2  ;;  %v461_v8 = vsub.s32 (!%p248_p2), 0, %v460_v3  ;;  %v465_v21 = vsub.s32 (!%p248_p2), 4, %v460_v3  ;;  %s1188_s19 = smov (!%p248_p2), 16   ;;  %s1189_s22 = smov (!%p248_p2), 112  }
   0xb   : > { %v316_v7 = vand.u32 (!%p248_p2), 15, %v304_v4  ;;  %vm1251_vm1 = vcmp.lt.s32.totalorder (!%p248_p2), %v309_v5, 15  ;;  %vm1255_vm2 = vcmp.gt.s32.totalorder (!%p248_p2), %v309_v5, 0  ;;  %v1170_v5 = vld [vmem:[%s1562_s3 + $0x4] ss:$8 sps:$4 sm:$0xff] (!%p248_p2)  }
   0xd   : > { %s1583_s25 = smov (!%p284_p3, %s1110_s25), 1  ;;  %vm518_vm3 = vcmp.lt.s32.totalorder %v316_v7, 15  ;;  %vm1259_vm4 = vcmp.gt.s32.totalorder %v316_v7, 0 }
   0xe   : > { %s1139_s26 = smul.u32 40, %s1583_s25  ;;  %s1137_s27 = sshll.u32 %s1583_s25, 2  ;;  %vm523_vm5 = vmpackc.low %vm518_vm3, %vm1251_vm1  ;;  %vm554_vm3 = vcmask 121856  }
   0xf   : > { %s293_s30 = scalar_lea.vmem %s1560_s1, %s1137_s27  ;;  %v524_v22 = vsel %vm523_vm5, 65537, %v1181_v1  ;;  %vm457_vm6 = vmpackc.low %vm1259_vm4, %vm1255_vm2  ;;  %vm1570_vm2 = vcmask 7168  }
  0x10   : > { %s288_s10 = scalar_lea.vmem %s1559_s0, %s1139_s26  ;;  %v1128_v6 = vld.sshfl [vmem:[%s293_s30] sm:$0x33 pattern:$0x76325410]  ;;  %v528_v24 = vrot.slane %v524_v22, %v461_v8  ;;  %v458_v25 = vsel %vm457_vm6, 65537, %v1181_v1  ;;  %v532_v28 = vrot.slane %v524_v22, %v465_v21 }
  0x11   : > { %v1159_v9 = vld [vmem:[%s288_s10 + $0x4] ss:$8 sps:$4 sm:$0xff]   ;;  %v433_v10 = vcombine.high %v1128_v6, %v1128_v6  ;;  %436 = vst [vmem:[#allocation2 + $0x8] sm:$0x3] %v1128_v6  ;;  %v1161_v13 = vld [vmem:[%s288_s10] ss:$8 sps:$4 sm:$0xff]   ;;  %v462_v26 = vrot.slane %v458_v25, %v461_v8  ;;  %v466_v29 = vrot.slane %v458_v25, %v465_v21 }
  0x12   : > { %381 = vmatprep.subr.bf16.mxu0 %v1159_v9  ;;  %v1162_v15 = vld [vmem:[%s288_s10 + $0x14] ss:$8 sps:$4 sm:$0xff]   ;;  %v337_v16 = vld [vmem:[%s288_s10 + $0x20] sm:$0x11]  ;;  %v1164_v18 = vld [vmem:[%s288_s10 + $0x10] ss:$8 sps:$4 sm:$0xff]   ;;  %533 = vrot.lane.b32.xlu1 %v528_v24, %s1182_s11 }
  0x13   : > { %437 = vst [vmem:[#allocation2 + $0x10] sm:$0x3] %v433_v10  ;;  %382 = vmatpush1.bf16.msra.mxu0 %v1161_v13  ;;  %v1126_v19 = vcombine.high %v337_v16, %v337_v16  ;;  %v1125_v20 = vcombine.low %v337_v16, %v337_v16  ;;  %467 = vrot.lane.b32.xlu0 %v462_v26, %s1183_s12  ;;  %v723_v9 = vld [vmem:[%s1563_s4 + $0x8] sm:$0xff]  ;;  %v722_v10 = vld [vmem:[%s1563_s4] sm:$0xff] }
  0x14   : > { %383 = vmatprep.subr.bf16.mxu0 %v1162_v15 }
  0x15   : > { %v379_v23 = vand.u32 %v1126_v19, %v374_v17  ;;  %v376_v27 = vand.u32 %v1125_v20, %v374_v17 }
  0x16   : > { %535 = vrot.lane.b32.xlu1 %v532_v28, %s1182_s11 }
  0x17   : > { %384 = vmatpush1.bf16.msra.mxu0 %v1164_v18  ;;  %469 = vrot.lane.b32.xlu0 %v466_v29, %s1183_s12 }
  0x18   : > { %385 = vmatprep.subr.bf16.mxu0 %v379_v23 }
  0x1a   : > { %566 = vrot.lane.b32.xlu1 %v466_v29, %s1184_s15 }
  0x1b   : > { %386 = vmatpush1.bf16.msra.mxu0 %v376_v27  ;;  %564 = vrot.lane.b32.xlu0 %v462_v26, %s1184_s15 }
  0x1e   : > { %1127 = vmatmul.mubr.msk.bf16.vlgmr.msra.gmra.mrb[0].mxu0 %vm368_vm7, %v1167_v30  ;;  %601 = vrot.lane.b32.xlu1 %v532_v28, %s1185_s16  ;;  %vm488_vm7 = vcmask 138240  }
  0x1f   : > { %599 = vrot.lane.b32.xlu0 %v528_v24, %s1185_s16 }
  0x22   : > { %630 = vrot.lane.b32.xlu1 %v466_v29, %s1186_s17 }
  0x23   : > { %628 = vrot.lane.b32.xlu0 %v462_v26, %s1186_s17 }
  0x26   : > { %678 = vrot.lane.b32.xlu1 %v532_v28, %s1187_s18 }
  0x27   : > { %676 = vrot.lane.b32.xlu0 %v528_v24, %s1187_s18 }
  0x2a   : > { %501 = vrot.lane.b32.xlu1 %v1181_v1, %s1188_s19 }
  0x2b   : > { %482 = vrot.lane.b32.xlu0 %v1181_v1, %s1187_s18 }
  0x2f   : > { %548 = vrot.lane.b32.xlu0 %v1181_v1, %s1186_s17 }
  0x84   : > { %v534_v31 = vpop.permute.xlu1 %533 }
  0x85   : > { %v468_v32 = vpop.permute.xlu0 %467 }
  0x88   : > { %v1294_v41 = vpop.permute.xlu1 %535 }
  0x89   : > { %v1296_v42 = vpop.permute.xlu0 %469  ;;  %v1322_v50 = vsel %vm537_vm10, %v534_v31, %v1294_v41  ;;  %vm541_vm15 = vcmp.ne.s16.totalorder %v1294_v41, 0 }
  0x8a   : > { %v1300_v43 = vsel %vm471_vm8, %v468_v32, %v1296_v42  ;;  %vm475_vm12 = vcmp.ne.s16.totalorder %v1296_v42, 0  ;;  %vm540_vm14 = vcmp.ne.s16.totalorder %v1322_v50, 0 }
  0x8b   : > { %vm474_vm11 = vcmp.ne.s16.totalorder %v1300_v43, 0 }
  0x8c   : > { %v1306_v45 = vpop.permute.xlu1 %566 }
  0x8d   : > { %v565_v46 = vpop.permute.xlu0 %564  ;;  %vm572_vm1 = vcmp.ne.s16.totalorder %v1306_v45, 0 }
  0x8e   : > { %v1317_v49 = vsel %vm568_vm9, %v565_v46, %v1306_v45 }
  0x8f   : > { %vm571_vm13 = vcmp.ne.s16.totalorder %v1317_v49, 0 }
  0x90   : > { %v602_v53 = vpop.permute.xlu1 %601 }
  0x91   : > { %v1336_v54 = vpop.permute.xlu0 %599 }
  0x92   : > { %vm604_vm0 = vcmp.ne.s16.totalorder %v1336_v54, 0  ;;  %v1361_v60 = vsel %vm1570_vm2, %v1336_v54, %v602_v53  ;;  %v1508_v54 = vld [vmem:[%s1564_s5] sm:$0xff] }
  0x93   : > { %vm1567_vm5 = vcmp.ne.s16.totalorder %v1361_v60, 0 }
  0x94   : > { %v631_v58 = vpop.permute.xlu1 %630 }
  0x95   : > { %v1363_v61 = vpop.permute.xlu0 %628 }
  0x96   : > { %vm1568_vm4 = vcmp.ne.s16.totalorder %v1363_v61, 0  ;;  %v1371_v62 = vsel %vm554_vm3, %v1363_v61, %v631_v58  ;;  %v1168_v58 = vld [vmem:[%s1562_s3] ss:$8 sps:$4 sm:$0xff]  }
  0x97   : > { %vm1569_vm6 = vcmp.ne.s16.totalorder %v1371_v62, 0 }
  0x98   : > { %v679_v2 = vpop.permute.xlu1 %678 }
  0x99   : > { %v1384_v3 = vpop.permute.xlu0 %676 }
  0x9a   : > { %v1395_v6 = vsel %vm488_vm7, %v1384_v3, %v679_v2 }
  0x9c   : > { %v502_v12 = vpop.permute.xlu1 %501 }
  0x9d   : > { %v483_v11 = vpop.permute.xlu0 %482 }
  0xa1   : > { %v549_v13 = vpop.permute.xlu0 %548 }
  0xf1   : > { %v415_v33 = vpop.f32.mrb[0].mxu0 }
  0xf2   : > { %v417_v34 = vpop.f32.mrb[1].mxu0 }
  0xf3   : > { %v419_v35 = vpop.f32.mrb[2].mxu0 }
  0xf4   : > { %v438_v36 = vpack.c.bf16 %v419_v35, %v415_v33  ;;  %v421_v37 = vpop.f32.mrb[3].mxu0 }
  0xf5   : > { %v439_v38 = vpack.c.bf16 %v421_v37, %v417_v34 }
  0xf6   : > { %v442_v39 = vrot.slane %v438_v36, 6 }
  0xf7   : > { %v443_v40 = vrot.slane %v439_v38, 6 }
  0xf8   : > { %446 = vst [vmem:[#allocation2 + $0x8] sm:$0xfc] %v442_v39 }
  0xf9   : > { %447 = vst [vmem:[#allocation2 + $0x10] sm:$0xfc] %v443_v40 }
  0xff   : > { %v1303_v44 = vld [vmem:[#allocation2 + $0x8] sm:$0xff] }
 0x100   : > { %503 = vrot.lane.b32.xlu1 %v1303_v44, %s1188_s19  ;;  %v477_v47 = vsel %vm474_vm11, %v1303_v44, 0  ;;  %v1313_v48 = vld [vmem:[#allocation2 + $0x10] sm:$0xff]  ;;  %v574_v52 = vsel %vm571_vm13, %v1303_v44, 0  ;;  %v543_v55 = vsel %vm540_vm14, %v1303_v44, 0  ;;  %v607_v57 = vsel %vm604_vm0, %v1303_v44, 0 }
 0x101   : > { %484 = vrot.lane.b32.xlu0 %v477_v47, %s1187_s18  ;;  %v478_v51 = vsel %vm475_vm12, %v1313_v48, 0  ;;  %v544_v56 = vsel %vm541_vm15, %v1313_v48, 0  ;;  %v575_v59 = vsel %vm572_vm1, %v1313_v48, 0  ;;  %v636_v63 = vsel %vm1568_vm4, %v1303_v44, 0 }
 0x102   : > { %v608_v0 = vsel %vm1567_vm5, %v1313_v48, 0  ;;  %v637_v4 = vsel %vm1569_vm6, %v1313_v48, 0  ;;  %vm507_vm5 = vcmask 130048   ;;  %vm682_vm4 = vcmp.ne.s16.totalorder %v1395_v6, 0 }
 0x103   : > { %1131 = vmatprep.mubr.msk.bf16.mxu1 %vm507_vm5, %v1170_v5  ;;  %v685_v7 = vsel %vm682_vm4, %v1313_v48, 0  ;;  %vm681_vm6 = vcmp.ne.s16.totalorder %v1384_v3, 0 }
 0x104   : > { %486 = vrot.lane.b32.xlu1 %v478_v51, %s1187_s18  ;;  %v684_v8 = vsel %vm681_vm6, %v1303_v44, 0 }
 0x105   : > { %505 = vrot.lane.b32.xlu0 %v1313_v48, %s1188_s19 }
 0x108   : > { %581 = vrot.lane.b32.xlu1 %v574_v52, %s1185_s16 }
 0x109   : > { %550 = vrot.lane.b32.xlu0 %v543_v55, %s1186_s17 }
 0x10c   : > { %552 = vrot.lane.b32.xlu1 %v544_v56, %s1186_s17 }
 0x10d   : > { %613 = vrot.lane.b32.xlu0 %v607_v57, %s1184_s15 }
 0x110   : > { %579 = vrot.lane.b32.xlu1 %v1181_v1, %s1185_s16 }
 0x111   : > { %583 = vrot.lane.b32.xlu0 %v575_v59, %s1185_s16 }
 0x114   : > { %617 = vrot.lane.b32.xlu1 %v1181_v1, %s1184_s15 }
 0x115   : > { %646 = vrot.lane.b32.xlu0 %v1181_v1, %s1182_s11 }
 0x118   : > { %642 = vrot.lane.b32.xlu1 %v636_v63, %s1182_s11 }
 0x119   : > { %615 = vrot.lane.b32.xlu0 %v608_v0, %s1184_s15 }
 0x11c   : > { %644 = vrot.lane.b32.xlu1 %v637_v4, %s1182_s11 }
 0x11d   : > { %662 = vrot.lane.b32.xlu0 %v1313_v48, %s1189_s22 }
 0x120   : > { %664 = vrot.lane.b32.xlu1 %v1181_v1, %s1189_s22 }
 0x121   : > { %660 = vrot.lane.b32.xlu0 %v1303_v44, %s1189_s22 }
 0x124   : > { %692 = vrot.lane.b32.xlu1 %v685_v7, %s1183_s12 }
 0x125   : > { %694 = vrot.lane.b32.xlu0 %v1181_v1, %s1183_s12 }
 0x128   : > { %690 = vrot.lane.b32.xlu1 %v684_v8, %s1183_s12 }
 0x129   : > { %726 = vperm.xlu0 %1157, %v722_v10  }
 0x12c   : > { %731 = vperm.xlu1 %1158, %v723_v9  }
 0x12d   : > { %825 = vrot.lane.b32.xlu0 %v1181_v1, %s1188_s19 }
 0x130   : > { %807 = vrot.lane.b32.xlu1 %v1181_v1, %s1187_s18 }
 0x134   : > { %846 = vrot.lane.b32.xlu1 %v1181_v1, %s1186_s17 }
 0x172   : > { %v504_v14 = vpop.permute.xlu1 %503 }
 0x173   : > { %v485_v15 = vpop.permute.xlu0 %484  ;;  %v508_v23 = vsel %vm507_vm5, %v502_v12, %v504_v14 }
 0x174   : > { %v489_v19 = vsel %vm488_vm7, %v483_v11, %v485_v15 }
 0x176   : > { %v487_v16 = vpop.permute.xlu1 %486 }
 0x177   : > { %v506_v17 = vpop.permute.xlu0 %505  ;;  %v490_v18 = vsel %vm488_vm7, %v485_v15, %v487_v16 }
 0x178   : > { %747 = vmatprep.subr.bf16.mxu1 %v490_v18  ;;  %v509_v20 = vsel %vm507_vm5, %v504_v14, %v506_v17 }
 0x179   : > { %748 = vmatpush1.bf16.msra.mxu1 %v489_v19 }
 0x17a   : > { %749 = vmatprep.subr.bf16.mxu1 %v509_v20  ;;  %v582_v21 = vpop.permute.xlu1 %581 }
 0x17b   : > { %v551_v22 = vpop.permute.xlu0 %550 }
 0x17c   : > { %v555_v27 = vsel %vm554_vm3, %v549_v13, %v551_v22 }
 0x17d   : > { %750 = vmatpush1.bf16.msra.mxu1 %v508_v23 }
 0x17e   : > { %v553_v24 = vpop.permute.xlu1 %552 }
 0x17f   : > { %v614_v25 = vpop.permute.xlu0 %613  ;;  %v556_v26 = vsel %vm554_vm3, %v551_v22, %v553_v24 }
 0x180   : > { %751 = vmatprep.subr.bf16.mxu1 %v556_v26 }
 0x181   : > { %752 = vmatpush1.bf16.msra.mxu1 %v555_v27 }
 0x182   : > { %v580_v28 = vpop.permute.xlu1 %579 }
 0x183   : > { %v584_v29 = vpop.permute.xlu0 %583  ;;  %v586_v31 = vsel %vm1570_vm2, %v580_v28, %v582_v21 }
 0x184   : > { %v587_v30 = vsel %vm1570_vm2, %v582_v21, %v584_v29  ;;  %vm666_vm2 = vcmask 916480  }
 0x185   : > { %753 = vmatprep.subr.bf16.mxu1 %v587_v30 }
 0x186   : > { %754 = vmatpush1.bf16.msra.mxu1 %v586_v31  ;;  %v618_v32 = vpop.permute.xlu1 %617 }
 0x187   : > { %v647_v33 = vpop.permute.xlu0 %646  ;;  %755 = vmatprep.subr.bf16.mxu1 %v1313_v48 }
 0x18a   : > { %756 = vmatpush1.bf16.msra.mxu1 %v1303_v44  ;;  %v643_v34 = vpop.permute.xlu1 %642 }
 0x18b   : > { %v616_v35 = vpop.permute.xlu0 %615 }
 0x18c   : > { %v620_v36 = vsel %vm568_vm9, %v616_v35, %v618_v32  ;;  %v619_v37 = vsel %vm568_vm9, %v614_v25, %v616_v35 }
 0x18d   : > { %757 = vmatprep.subr.bf16.mxu1 %v620_v36 }
 0x18e   : > { %758 = vmatpush1.bf16.msra.mxu1 %v619_v37  ;;  %v645_v38 = vpop.permute.xlu1 %644 }
 0x18f   : > { %v663_v39 = vpop.permute.xlu0 %662  ;;  %v649_v40 = vsel %vm537_vm10, %v645_v38, %v647_v33  ;;  %v648_v46 = vsel %vm537_vm10, %v643_v34, %v645_v38 }
 0x190   : > { %759 = vmatprep.subr.bf16.mxu1 %v649_v40 }
 0x192   : > { %760 = vmatpush1.bf16.msra.mxu1 %v648_v46  ;;  %v665_v47 = vpop.permute.xlu1 %664 }
 0x193   : > { %v661_v48 = vpop.permute.xlu0 %660  ;;  %v668_v44 = vsel %vm666_vm2, %v663_v39, %v665_v47 }
 0x194   : > { %761 = vmatprep.subr.bf16.mxu1 %v668_v44  ;;  %v667_v51 = vsel %vm666_vm2, %v661_v48, %v663_v39 }
 0x196   : > { %762 = vmatpush1.bf16.msra.mxu1 %v667_v51  ;;  %v693_v52 = vpop.permute.xlu1 %692 }
 0x197   : > { %v695_v53 = vpop.permute.xlu0 %694 }
 0x198   : > { %v697_v55 = vsel %vm471_vm8, %v693_v52, %v695_v53 }
 0x199   : > { %763 = vmatprep.subr.bf16.mxu1 %v697_v55 }
 0x19a   : > { %v691_v56 = vpop.permute.xlu1 %690 }
 0x19b   : > { %v696_v57 = vsel %vm471_vm8, %v691_v56, %v693_v52 }
 0x19c   : > { %764 = vmatpush1.bf16.msra.mxu1 %v696_v57 }
 0x19f   : > { %780 = vmatmul.mubr.bf16.vlgmr.msra.gmra.mrb[0].mxu1 %v1168_v58 }
 0x1a8   : > { %v727_v59 = vpop.permute.xlu0 %726 }
 0x1ab   : > { %v732_v4 = vpop.permute.xlu1 %731 }
 0x1ac   : > { %v826_v23 = vpop.permute.xlu0 %825 }
 0x1af   : > { %v808_v22 = vpop.permute.xlu1 %807 }
 0x1b3   : > { %v847_v6 = vpop.permute.xlu1 %846 }
 0x272   : > { %v781_v63 = vpop.f32.mrb[0].mxu1 }
 0x273   : > { %v782_v0 = vadd.f32 %v781_v63, %v727_v59  ;;  %v783_v2 = vpop.f32.mrb[1].mxu1 }
 0x274   : > { %v784_v5 = vadd.f32 %v783_v2, %v727_v59  ;;  %v785_v7 = vpop.f32.mrb[2].mxu1 }
 0x275   : > { %v786_v8 = vadd.f32 %v785_v7, %v732_v4  ;;  %v787_v9 = vpop.f32.mrb[3].mxu1  ;;  %v790_v11 = vmax.f32 %v782_v0, 0.0 }
 0x276   : > { %v788_v10 = vadd.f32 %v787_v9, %v732_v4  ;;  %v791_v13 = vmax.f32 %v784_v5, 0.0 }
 0x277   : > { %v792_v12 = vmax.f32 %v786_v8, 0.0  ;;  %v1132_v8 = vcombine.low %v1508_v54, %v1508_v54 }
 0x278   : > { %v793_v14 = vmax.f32 %v788_v10, 0.0 }
 0x279   : > { %v1449_v15 = vpack.c.bf16 %v792_v12, %v790_v11 }
 0x27a   : > { %v1451_v16 = vpack.c.bf16 %v793_v14, %v791_v13 }
 0x27b   : > { %796 = vst [vmem:[#allocation2 + $0x8] sm:$0xff] %v1449_v15  ;;  %827 = vrot.lane.b32.xlu0 %v1449_v15, %s1188_s19  ;;  %v802_v17 = vsel %vm474_vm11, %v1449_v15, 0  ;;  %v862_v19 = vsel %vm571_vm13, %v1449_v15, 0  ;;  %v841_v43 = vsel %vm540_vm14, %v1449_v15, 0  ;;  %v886_v20 = vsel %vm604_vm0, %v1449_v15, 0 }
 0x27c   : > { %797 = vst [vmem:[#allocation2 + $0x10] sm:$0xff] %v1451_v16  ;;  %809 = vrot.lane.b32.xlu1 %v802_v17, %s1187_s18  ;;  %v803_v18 = vsel %vm475_vm12, %v1451_v16, 0  ;;  %v842_v42 = vsel %vm541_vm15, %v1451_v16, 0  ;;  %v863_v49 = vsel %vm572_vm1, %v1451_v16, 0  ;;  %vm1577_vm11 = vcmp.ne.s16.totalorder %v1363_v61, 0 }
 0x27d   : > { %v907_v41 = vsel %vm1577_vm11, %v1449_v15, 0  ;;  %vm1578_vm12 = vcmp.ne.s16.totalorder %v1361_v60, 0  ;;  %vm1579_vm13 = vcmp.ne.s16.totalorder %v1371_v62, 0  ;;  %v1133_v60 = vcombine.high %v1508_v54, %v1508_v54  ;;  %v983_v62 = vld [vmem:[%s1565_s6] sm:$0xff] }
 0x27e   : > { %v887_v50 = vsel %vm1578_vm12, %v1451_v16, 0  ;;  %v908_v45 = vsel %vm1579_vm13, %v1451_v16, 0  ;;  %v947_v61 = vsel %vm682_vm4, %v1451_v16, 0  ;;  %v946_v21 = vsel %vm681_vm6, %v1449_v15, 0 }
 0x27f   : > { %811 = vrot.lane.b32.xlu0 %v803_v18, %s1187_s18  ;;  %1134 = vmatprep.mubr.msk.bf16.mxu0 %vm507_vm5, %v1133_v60  ;;  %vm1580_vm14 = vcmask 7168  }
 0x280   : > { %829 = vrot.lane.b32.xlu1 %v1451_v16, %s1188_s19  ;;  %vm1581_vm15 = vmmov %vm1580_vm14 }
 0x283   : > { %869 = vrot.lane.b32.xlu0 %v862_v19, %s1185_s16 }
 0x284   : > { %848 = vrot.lane.b32.xlu1 %v841_v43, %s1186_s17 }
 0x287   : > { %850 = vrot.lane.b32.xlu0 %v842_v42, %s1186_s17 }
 0x288   : > { %892 = vrot.lane.b32.xlu1 %v886_v20, %s1184_s15 }
 0x28b   : > { %867 = vrot.lane.b32.xlu0 %v1181_v1, %s1185_s16 }
 0x28c   : > { %871 = vrot.lane.b32.xlu1 %v863_v49, %s1185_s16 }
 0x28f   : > { %896 = vrot.lane.b32.xlu0 %v1181_v1, %s1184_s15 }
 0x290   : > { %917 = vrot.lane.b32.xlu1 %v1181_v1, %s1182_s11 }
 0x293   : > { %913 = vrot.lane.b32.xlu0 %v907_v41, %s1182_s11 }
 0x294   : > { %894 = vrot.lane.b32.xlu1 %v887_v50, %s1184_s15 }
 0x297   : > { %915 = vrot.lane.b32.xlu0 %v908_v45, %s1182_s11 }
 0x298   : > { %933 = vrot.lane.b32.xlu1 %v1451_v16, %s1189_s22 }
 0x29b   : > { %935 = vrot.lane.b32.xlu0 %v1181_v1, %s1189_s22 }
 0x29c   : > { %931 = vrot.lane.b32.xlu1 %v1449_v15, %s1189_s22 }
 0x29f   : > { %954 = vrot.lane.b32.xlu0 %v947_v61, %s1183_s12 }
 0x2a0   : > { %956 = vrot.lane.b32.xlu1 %v1181_v1, %s1183_s12 }
 0x2a3   : > { %952 = vrot.lane.b32.xlu0 %v946_v21, %s1183_s12  ;;  %s1138_s12 = sshll.u32 %s1583_s25, 4 }
 0x2a4   : > { %986 = vperm.xlu1 %1158, %v983_v62   ;;  %s298_s15 = scalar_lea.vmem %s1566_s7, %s1138_s12 }
 0x2ed   : > { %v828_v24 = vpop.permute.xlu0 %827 }
 0x2ee   : > { %v810_v25 = vpop.permute.xlu1 %809  ;;  %v831_v31 = vsel %vm507_vm5, %v826_v23, %v828_v24 }
 0x2ef   : > { %v813_v28 = vsel %vm488_vm7, %v808_v22, %v810_v25 }
 0x2f1   : > { %v812_v26 = vpop.permute.xlu0 %811 }
 0x2f2   : > { %v830_v27 = vpop.permute.xlu1 %829  ;;  %v814_v1 = vsel %vm488_vm7, %v810_v25, %v812_v26 }
 0x2f3   : > { %998 = vmatprep.subr.bf16.mxu0 %v814_v1  ;;  %v832_v29 = vsel %vm507_vm5, %v828_v24, %v830_v27 }
 0x2f4   : > { %999 = vmatpush1.bf16.msra.mxu0 %v813_v28 }
 0x2f5   : > { %v870_v3 = vpop.permute.xlu0 %869  ;;  %1000 = vmatprep.subr.bf16.mxu0 %v832_v29 }
 0x2f6   : > { %v849_v30 = vpop.permute.xlu1 %848 }
 0x2f7   : > { %v852_v35 = vsel %vm554_vm3, %v847_v6, %v849_v30 }
 0x2f8   : > { %1001 = vmatpush1.bf16.msra.mxu0 %v831_v31 }
 0x2f9   : > { %v851_v32 = vpop.permute.xlu0 %850 }
 0x2fa   : > { %v893_v33 = vpop.permute.xlu1 %892  ;;  %v853_v34 = vsel %vm554_vm3, %v849_v30, %v851_v32 }
 0x2fb   : > { %1002 = vmatprep.subr.bf16.mxu0 %v853_v34 }
 0x2fc   : > { %1003 = vmatpush1.bf16.msra.mxu0 %v852_v35 }
 0x2fd   : > { %v868_v36 = vpop.permute.xlu0 %867 }
 0x2fe   : > { %v872_v37 = vpop.permute.xlu1 %871  ;;  %v873_v39 = vsel %vm1581_vm15, %v868_v36, %v870_v3 }
 0x2ff   : > { %v874_v38 = vsel %vm1580_vm14, %v870_v3, %v872_v37 }
 0x300   : > { %1004 = vmatprep.subr.bf16.mxu0 %v874_v38 }
 0x301   : > { %v897_v40 = vpop.permute.xlu0 %896  ;;  %1005 = vmatpush1.bf16.msra.mxu0 %v873_v39 }
 0x302   : > { %1006 = vmatprep.subr.bf16.mxu0 %v1451_v16  ;;  %v918_v46 = vpop.permute.xlu1 %917 }
 0x305   : > { %v914_v47 = vpop.permute.xlu0 %913  ;;  %1007 = vmatpush1.bf16.msra.mxu0 %v1449_v15 }
 0x306   : > { %v895_v48 = vpop.permute.xlu1 %894 }
 0x307   : > { %v898_v44 = vsel %vm568_vm9, %v893_v33, %v895_v48  ;;  %v899_v51 = vsel %vm568_vm9, %v895_v48, %v897_v40 }
 0x308   : > { %1008 = vmatprep.subr.bf16.mxu0 %v899_v51 }
 0x309   : > { %v916_v52 = vpop.permute.xlu0 %915  ;;  %1009 = vmatpush1.bf16.msra.mxu0 %v898_v44 }
 0x30a   : > { %v934_v53 = vpop.permute.xlu1 %933  ;;  %v920_v55 = vsel %vm537_vm10, %v916_v52, %v918_v46  ;;  %v919_v56 = vsel %vm537_vm10, %v914_v47, %v916_v52 }
 0x30b   : > { %1010 = vmatprep.subr.bf16.mxu0 %v920_v55 }
 0x30d   : > { %v936_v57 = vpop.permute.xlu0 %935  ;;  %1011 = vmatpush1.bf16.msra.mxu0 %v919_v56 }
 0x30e   : > { %v932_v58 = vpop.permute.xlu1 %931  ;;  %v938_v59 = vsel %vm666_vm2, %v934_v53, %v936_v57 }
 0x30f   : > { %v937_v63 = vsel %vm666_vm2, %v932_v58, %v934_v53  ;;  %1012 = vmatprep.subr.bf16.mxu0 %v938_v59 }
 0x311   : > { %v955_v0 = vpop.permute.xlu0 %954  ;;  %1013 = vmatpush1.bf16.msra.mxu0 %v937_v63 }
 0x312   : > { %v957_v2 = vpop.permute.xlu1 %956 }
 0x313   : > { %v959_v4 = vsel %vm471_vm8, %v955_v0, %v957_v2 }
 0x314   : > { %1014 = vmatprep.subr.bf16.mxu0 %v959_v4 }
 0x315   : > { %v953_v5 = vpop.permute.xlu0 %952 }
 0x316   : > { %v958_v7 = vsel %vm471_vm8, %v953_v5, %v955_v0 }
 0x317   : > { %1015 = vmatpush1.bf16.msra.mxu0 %v958_v7 }
 0x31a   : > { %1031 = vmatmul.mubr.bf16.vlgmr.msra.gmra.mrb[4].mxu0 %v1132_v8 }
 0x323   : > { %v987_v9 = vpop.permute.xlu1 %986 }
 0x3ed   : > { %v1032_v10 = vpop.f32.mrb[4].mxu0 }
 0x3ee   : > { %v1033_v11 = vadd.f32 %v1032_v10, %v987_v9  ;;  %v1034_v12 = vpop.f32.mrb[5].mxu0 }
 0x3ef   : > { %v1035_v13 = vadd.f32 %v1034_v12, %v987_v9  ;;  %v1036_v14 = vpop.f32.mrb[6].mxu0 }
 0x3f0   : > { %v1039_v15 = vmax.f32 %v1033_v11, 0.0  ;;  %v1037_v16 = vpop.f32.mrb[7].mxu0 }
 0x3f1   : > { %v1040_v17 = vmax.f32 %v1035_v13, 0.0 }
 0x3f2   : > { %1041 = vst [vmem:[%s298_s15] sm:$0xff] %v1039_v15 }
 0x3f3   : > { %1042 = vst [vmem:[%s298_s15 + $0x8] sm:$0xff] %v1040_v17 }
 0x3f4 PF: > { %s17_s24 = sadd.s32 1, %s1179_s24  }
 0x3f5   : > { %p14_p4 = scmp.ge.s32.totalorder %s17_s24, 4  }
 0x3f7   :  { %16 = sbr.rel (!%p14_p4) target bundleno = 1 (0x1), region = 81 }

</bundles_post_ra>
